<compile_context>
chip_gen: v5e
topology: v5e:2x2
jax: 0.10.0
libtpu: 0.0.40
codegen_flags: <defaults>
</compile_context>

<pallas_src>
import numpy as np
import jax
import jax.numpy as jnp
from jax.experimental import pallas as pl
from jax.experimental.pallas import tpu as pltpu

LOG_STD_MIN, LOG_STD_MAX = -20.0, 2.0


# ----------------------------------------------------------------------------
# Parameter init (deterministic, mimics make_linear_layer: orthogonal weight
# with gain=sqrt(2), zero bias).  Weights stored torch-style: (out, in).
# ----------------------------------------------------------------------------
def orthogonal_init(key, out_dim, in_dim, gain):
    rows, cols = out_dim, in_dim
    flat = jax.random.normal(key, (rows, cols), dtype=jnp.float32)
    if rows < cols:
        flat = flat.T
    q, r = jnp.linalg.qr(flat)
    d = jnp.sign(jnp.diag(r))
    q = q * d[None, :]
    if rows < cols:
        q = q.T
    return (gain * q).astype(jnp.float32)  # (out_dim, in_dim)


def make_linear_params(key, in_dim, out_dim, std=np.sqrt(2.0)):
    w = orthogonal_init(key, out_dim, in_dim, std)  # (out, in), torch layout
    b = jnp.zeros((out_dim,), dtype=jnp.float32)
    return w, b


def round_up(x, m):
    return (x + m - 1) // m * m


def cdiv(a, b):
    return -(-a // b)


# ----------------------------------------------------------------------------
# One-time parameter preparation (off the forward hot path).  Because the
# kernel computes in the transposed layout (h is [H, TB]), the torch-layout
# (out, in) weights are used as-is; biases become column vectors; the four
# heads are fused into one [head_sub, H] weight with sublane-padded rows;
# per-row clip bounds are precomputed.
# ----------------------------------------------------------------------------
def prepare_params(params, state_dim):
    (w1, b1), (w2, b2), (wsm, bsm), (wsl, bsl), (wrm, brm), (wrl, brl) = params
    H = w1.shape[0]
    S = state_dim
    A = w1.shape[1] - S
    head_dim = 2 * S + 2
    head_sub = round_up(head_dim, 8)  # sublane-aligned fused-head rows

    w1 = jnp.asarray(w1, jnp.float32)                      # (H, S+A)
    b1c = jnp.asarray(b1, jnp.float32).reshape(H, 1)       # (H, 1)
    w2 = jnp.asarray(w2, jnp.float32)                      # (H, H)
    b2c = jnp.asarray(b2, jnp.float32).reshape(H, 1)       # (H, 1)

    # fused head: rows [0:S]=state_mean, [S:2S]=state_log_std,
    # [2S]=reward_mean, [2S+1]=reward_log_std, remaining rows zero-padding.
    wh = jnp.concatenate(
        [jnp.asarray(w, jnp.float32) for w in (wsm, wsl, wrm, wrl)], axis=0
    )                                                      # (2S+2, H)
    bh = jnp.concatenate(
        [jnp.asarray(b, jnp.float32) for b in (bsm, bsl, brm, brl)]
    ).reshape(head_dim, 1)                                 # (2S+2, 1)
    if head_sub > head_dim:
        pad = head_sub - head_dim
        wh = jnp.pad(wh, ((0, pad), (0, 0)))
        bh = jnp.pad(bh, ((0, pad), (0, 0)))

    # per-row clip bounds (+-inf on mean rows, [-20, 2] on log-std rows)
    lo = jnp.full((head_sub, 1), float("-inf"), jnp.float32)
    lo = lo.at[S:2 * S].set(LOG_STD_MIN).at[2 * S + 1].set(LOG_STD_MIN)
    hi = jnp.full((head_sub, 1), float("inf"), jnp.float32)
    hi = hi.at[S:2 * S].set(LOG_STD_MAX).at[2 * S + 1].set(LOG_STD_MAX)

    return dict(
        w1=w1, b1=b1c, w2=w2, b2=b2c, wh=wh, bh=bh, lo=lo, hi=hi,
        state_dim=S, action_dim=A, hidden_dim=H, head_sub=head_sub,
    )


# ----------------------------------------------------------------------------
# Pallas kernel: one batch tile per grid step, computed feature-major so the
# only output is a [head_sub, TB] lane-dense slab.  Weights/biases/bounds are
# VMEM-resident (same block every step).  Clip fused into the epilogue.
# ----------------------------------------------------------------------------
def env_dynamics_kernel(
    x_ref,                       # [S+A, TB]  (features on sublanes, batch on lanes)
    w1_ref, b1_ref,              # [H, S+A], [H, 1]
    w2_ref, b2_ref,              # [H, H],   [H, 1]
    wh_ref, bh_ref,              # [HEAD_SUB, H], [HEAD_SUB, 1]
    lo_ref, hi_ref,              # [HEAD_SUB, 1] clip bounds
    out_ref,                     # [HEAD_SUB, TB]
):
    # layer 1 + ReLU
    h = jnp.dot(w1_ref[...], x_ref[...], preferred_element_type=jnp.float32)
    h = jnp.maximum(h + b1_ref[...], 0.0)

    # layer 2 + ReLU
    h = jnp.dot(w2_ref[...], h, preferred_element_type=jnp.float32) + b2_ref[...]
    h = jnp.maximum(h, 0.0)

    # fused heads + fused clip epilogue -> single lane-dense store
    o = jnp.dot(wh_ref[...], h, preferred_element_type=jnp.float32) + bh_ref[...]
    out_ref[...] = jnp.minimum(jnp.maximum(o, lo_ref[...]), hi_ref[...])


def env_dynamics_forward(state, action, prepped, tile_b=4096):
    """state: [B, S], action: [B, A] -> (state_mean, state_log_std,
    reward_mean, reward_log_std), matching the PyTorch module."""
    S = prepped["state_dim"]
    A = prepped["action_dim"]
    H = prepped["hidden_dim"]
    head_sub = prepped["head_sub"]
    B = state.shape[0]

    # merge state/action (tiny, 48 B/row) and flip to feature-major layout
    x = jnp.concatenate(
        [state.astype(jnp.float32), action.astype(jnp.float32)], axis=-1
    ).T                                                    # [S+A, B]

    # batch tiles: single full-batch tile for small B; otherwise big
    # lane-aligned tiles (~tile_b) so grid-step fixed cost is amortized and
    # both v7x TensorCores get several tiles each.
    if B <= tile_b:
        tb = round_up(B, 128)
    else:
        tb = round_up(cdiv(B, cdiv(B, tile_b)), 128)
    b_pad = round_up(B, tb)
    if b_pad != B:
        x = jnp.pad(x, ((0, 0), (0, b_pad - B)))
    grid = (b_pad // tb,)

    def resident(arr):
        return pl.BlockSpec(arr.shape, lambda i: (0, 0))

    flops = 2 * b_pad * ((S + A) * H + H * H + H * head_sub)
    bytes_accessed = 4 * (
        b_pad * (S + A + head_sub)                 # activations in / out
        + H * (S + A + 1) + H * (H + 1) + head_sub * (H + 3)  # weights/biases/bounds
    )
    cost = pl.CostEstimate(flops=flops, transcendentals=0,
                           bytes_accessed=bytes_accessed)

    out = pl.pallas_call(
        env_dynamics_kernel,
        out_shape=jax.ShapeDtypeStruct((head_sub, b_pad), jnp.float32),
        grid=grid,
        in_specs=[
            pl.BlockSpec((S + A, tb), lambda i: (0, i)),
            resident(prepped["w1"]), resident(prepped["b1"]),
            resident(prepped["w2"]), resident(prepped["b2"]),
            resident(prepped["wh"]), resident(prepped["bh"]),
            resident(prepped["lo"]), resident(prepped["hi"]),
        ],
        out_specs=pl.BlockSpec((head_sub, tb), lambda i: (0, i)),
        compiler_params=pltpu.CompilerParams(
            dimension_semantics=("parallel",),     # megacore: shard batch tiles
            vmem_limit_bytes=32 * 1024 * 1024,     # cover v5e's 16 MiB default
        ),
        cost_estimate=cost,
    )(
        x,
        prepped["w1"], prepped["b1"],
        prepped["w2"], prepped["b2"],
        prepped["wh"], prepped["bh"],
        prepped["lo"], prepped["hi"],
    )

    out = out[:, :B]                       # drop batch padding
    state_mean = out[:S].T                 # [B, S]
    state_log_std = out[S:2 * S].T         # [B, S]  (clip already done in-kernel)
    reward_mean = out[2 * S]               # [B]     (squeeze(-1) built in)
    reward_log_std = out[2 * S + 1]        # [B]
    return state_mean, state_log_std, reward_mean, reward_log_std


# ----------------------------------------------------------------------------
# Pure-JAX reference (torch-layout params) for the sanity check.
# ----------------------------------------------------------------------------
def env_dynamics_ref(state, action, params):
    (w1, b1), (w2, b2), (wsm, bsm), (wsl, bsl), (wrm, brm), (wrl, brl) = params
    x = jnp.concatenate([state, action], axis=-1)
    h = jnp.maximum(jnp.dot(x, w1.T) + b1, 0.0)
    h = jnp.maximum(jnp.dot(h, w2.T) + b2, 0.0)
    sm = jnp.dot(h, wsm.T) + bsm
    sl = jnp.clip(jnp.dot(h, wsl.T) + bsl, LOG_STD_MIN, LOG_STD_MAX)
    rm = (jnp.dot(h, wrm.T) + brm).squeeze(-1)
    rl = jnp.clip((jnp.dot(h, wrl.T) + brl).squeeze(-1), LOG_STD_MIN, LOG_STD_MAX)
    return sm, sl, rm, rl


if __name__ == "__main__":
    # small shapes consistent with the module (hidden chosen lane-aligned)
    B, state_dim, action_dim, hidden_dim = 256, 8, 4, 128

    key = jax.random.PRNGKey(0)
    keys = jax.random.split(key, 8)

    params = (
        make_linear_params(keys[0], state_dim + action_dim, hidden_dim),
        make_linear_params(keys[1], hidden_dim, hidden_dim),
        make_linear_params(keys[2], hidden_dim, state_dim),
        make_linear_params(keys[3], hidden_dim, state_dim),
        make_linear_params(keys[4], hidden_dim, 1),
        make_linear_params(keys[5], hidden_dim, 1),
    )
    prepped = prepare_params(params, state_dim)   # one-time, off the hot path

    state = jax.random.normal(keys[6], (B, state_dim), dtype=jnp.float32)
    action = jax.random.normal(keys[7], (B, action_dim), dtype=jnp.float32)

    outs = env_dynamics_forward(state, action, prepped)
    outs = jax.block_until_ready(outs)

    refs = env_dynamics_ref(state, action, params)
    # Tolerance accounts for TPU default f32 matmul precision (bf16 MXU passes)
    # differing between the in-kernel dots and XLA's reference dots.
    for o, r in zip(outs, refs):
        np.testing.assert_allclose(np.asarray(o), np.asarray(r),
                                   rtol=2e-2, atol=2e-2)

    assert outs[0].shape == (B, state_dim)
    assert outs[1].shape == (B, state_dim)
    assert outs[2].shape == (B,)
    assert outs[3].shape == (B,)

    print("KERNEL_OK")
</pallas_src>

<mosaic_0001>
module attributes {stable_mosaic.version = 11 : i64} {
  func.func @env_dynamics_kernel(%arg0: i32, %arg1: memref<12x256xf32, #tpu.memory_space<vmem>>, %arg2: memref<128x12xf32, #tpu.memory_space<vmem>>, %arg3: memref<128x1xf32, #tpu.memory_space<vmem>>, %arg4: memref<128x128xf32, #tpu.memory_space<vmem>>, %arg5: memref<128x1xf32, #tpu.memory_space<vmem>>, %arg6: memref<24x128xf32, #tpu.memory_space<vmem>>, %arg7: memref<24x1xf32, #tpu.memory_space<vmem>>, %arg8: memref<24x1xf32, #tpu.memory_space<vmem>>, %arg9: memref<24x1xf32, #tpu.memory_space<vmem>>, %arg10: memref<24x256xf32, #tpu.memory_space<vmem>>) attributes {dimension_semantics = [#tpu.dimension_semantics<parallel>], iteration_bounds = array<i64: 1>, scalar_prefetch = 0 : i64, scratch_operands = 0 : i64, tpu.core_type = #tpu.core_type<tc>, window_params = [{transform_indices = @transform_0, window_bounds = array<i64: 12, 256>}, {pipeline_mode = #tpu.pipeline_mode<synchronous>, transform_indices = @transform_1, window_bounds = array<i64: 128, 12>}, {pipeline_mode = #tpu.pipeline_mode<synchronous>, transform_indices = @transform_2, window_bounds = array<i64: 128, 1>}, {pipeline_mode = #tpu.pipeline_mode<synchronous>, transform_indices = @transform_3, window_bounds = array<i64: 128, 128>}, {pipeline_mode = #tpu.pipeline_mode<synchronous>, transform_indices = @transform_4, window_bounds = array<i64: 128, 1>}, {pipeline_mode = #tpu.pipeline_mode<synchronous>, transform_indices = @transform_5, window_bounds = array<i64: 24, 128>}, {pipeline_mode = #tpu.pipeline_mode<synchronous>, transform_indices = @transform_6, window_bounds = array<i64: 24, 1>}, {pipeline_mode = #tpu.pipeline_mode<synchronous>, transform_indices = @transform_7, window_bounds = array<i64: 24, 1>}, {pipeline_mode = #tpu.pipeline_mode<synchronous>, transform_indices = @transform_8, window_bounds = array<i64: 24, 1>}, {transform_indices = @transform_9, window_bounds = array<i64: 24, 256>}]} {
    %c0 = arith.constant 0 : index
    %c0_0 = arith.constant 0 : index
    %0 = vector.load %arg2[%c0, %c0_0] : memref<128x12xf32, #tpu.memory_space<vmem>>, vector<128x12xf32>
    %c0_1 = arith.constant 0 : index
    %c0_2 = arith.constant 0 : index
    %1 = vector.load %arg1[%c0_1, %c0_2] : memref<12x256xf32, #tpu.memory_space<vmem>>, vector<12x256xf32>
    %cst = arith.constant dense<0.000000e+00> : vector<128x256xf32>
    %2 = tpu.matmul %0, %1, %cst {dimension_numbers = #tpu.dot_dimension_numbers<[1], [0], [0], [1], [0, 0, 1, 1], [], []>} : vector<128x12xf32>, vector<12x256xf32>, vector<128x256xf32> -> vector<128x256xf32>
    %c0_3 = arith.constant 0 : index
    %c0_4 = arith.constant 0 : index
    %3 = vector.load %arg3[%c0_3, %c0_4] : memref<128x1xf32, #tpu.memory_space<vmem>>, vector<128x1xf32>
    %4 = vector.broadcast %3 : vector<128x1xf32> to vector<128x256xf32>
    %5 = arith.addf %2, %4 : vector<128x256xf32>
    %cst_5 = arith.constant 0.000000e+00 : f32
    %6 = vector.broadcast %cst_5 : f32 to vector<128x256xf32>
    %7 = arith.maximumf %5, %6 : vector<128x256xf32>
    %c0_6 = arith.constant 0 : index
    %c0_7 = arith.constant 0 : index
    %8 = vector.load %arg4[%c0_6, %c0_7] : memref<128x128xf32, #tpu.memory_space<vmem>>, vector<128x128xf32>
    %cst_8 = arith.constant dense<0.000000e+00> : vector<128x256xf32>
    %9 = tpu.matmul %8, %7, %cst_8 {dimension_numbers = #tpu.dot_dimension_numbers<[1], [0], [0], [1], [0, 0, 1, 1], [], []>} : vector<128x128xf32>, vector<128x256xf32>, vector<128x256xf32> -> vector<128x256xf32>
    %c0_9 = arith.constant 0 : index
    %c0_10 = arith.constant 0 : index
    %10 = vector.load %arg5[%c0_9, %c0_10] : memref<128x1xf32, #tpu.memory_space<vmem>>, vector<128x1xf32>
    %11 = vector.broadcast %10 : vector<128x1xf32> to vector<128x256xf32>
    %12 = arith.addf %9, %11 : vector<128x256xf32>
    %cst_11 = arith.constant 0.000000e+00 : f32
    %13 = vector.broadcast %cst_11 : f32 to vector<128x256xf32>
    %14 = arith.maximumf %12, %13 : vector<128x256xf32>
    %c0_12 = arith.constant 0 : index
    %c0_13 = arith.constant 0 : index
    %15 = vector.load %arg6[%c0_12, %c0_13] : memref<24x128xf32, #tpu.memory_space<vmem>>, vector<24x128xf32>
    %cst_14 = arith.constant dense<0.000000e+00> : vector<24x256xf32>
    %16 = tpu.matmul %15, %14, %cst_14 {dimension_numbers = #tpu.dot_dimension_numbers<[1], [0], [0], [1], [0, 0, 1, 1], [], []>} : vector<24x128xf32>, vector<128x256xf32>, vector<24x256xf32> -> vector<24x256xf32>
    %c0_15 = arith.constant 0 : index
    %c0_16 = arith.constant 0 : index
    %17 = vector.load %arg7[%c0_15, %c0_16] : memref<24x1xf32, #tpu.memory_space<vmem>>, vector<24x1xf32>
    %18 = vector.broadcast %17 : vector<24x1xf32> to vector<24x256xf32>
    %19 = arith.addf %16, %18 : vector<24x256xf32>
    %c0_17 = arith.constant 0 : index
    %c0_18 = arith.constant 0 : index
    %20 = vector.load %arg8[%c0_17, %c0_18] : memref<24x1xf32, #tpu.memory_space<vmem>>, vector<24x1xf32>
    %21 = vector.broadcast %20 : vector<24x1xf32> to vector<24x256xf32>
    %22 = arith.maximumf %19, %21 : vector<24x256xf32>
    %c0_19 = arith.constant 0 : index
    %c0_20 = arith.constant 0 : index
    %23 = vector.load %arg9[%c0_19, %c0_20] : memref<24x1xf32, #tpu.memory_space<vmem>>, vector<24x1xf32>
    %24 = vector.broadcast %23 : vector<24x1xf32> to vector<24x256xf32>
    %25 = arith.minimumf %22, %24 : vector<24x256xf32>
    %c0_21 = arith.constant 0 : index
    %c0_22 = arith.constant 0 : index
    %26 = vector.load %arg10[%c0_21, %c0_22] : memref<24x256xf32, #tpu.memory_space<vmem>>, vector<24x256xf32>
    tpu.vector_store %arg10[%c0_21, %c0_22], %25 {strides = array<i32>} : memref<24x256xf32, #tpu.memory_space<vmem>>, vector<24x256xf32>,
    return
  }
  func.func @transform_0(%arg0: i32) -> (i32, i32) {
    %c0_i32 = arith.constant 0 : i32
    %c0_i32_0 = arith.constant 0 : i32
    return %c0_i32, %arg0 : i32, i32
  }
  func.func @transform_1(%arg0: i32) -> (i32, i32) {
    %c0_i32 = arith.constant 0 : i32
    %c0_i32_0 = arith.constant 0 : i32
    %c0_i32_1 = arith.constant 0 : i32
    return %c0_i32, %c0_i32_0 : i32, i32
  }
  func.func @transform_2(%arg0: i32) -> (i32, i32) {
    %c0_i32 = arith.constant 0 : i32
    %c0_i32_0 = arith.constant 0 : i32
    %c0_i32_1 = arith.constant 0 : i32
    return %c0_i32, %c0_i32_0 : i32, i32
  }
  func.func @transform_3(%arg0: i32) -> (i32, i32) {
    %c0_i32 = arith.constant 0 : i32
    %c0_i32_0 = arith.constant 0 : i32
    %c0_i32_1 = arith.constant 0 : i32
    return %c0_i32, %c0_i32_0 : i32, i32
  }
  func.func @transform_4(%arg0: i32) -> (i32, i32) {
    %c0_i32 = arith.constant 0 : i32
    %c0_i32_0 = arith.constant 0 : i32
    %c0_i32_1 = arith.constant 0 : i32
    return %c0_i32, %c0_i32_0 : i32, i32
  }
  func.func @transform_5(%arg0: i32) -> (i32, i32) {
    %c0_i32 = arith.constant 0 : i32
    %c0_i32_0 = arith.constant 0 : i32
    %c0_i32_1 = arith.constant 0 : i32
    return %c0_i32, %c0_i32_0 : i32, i32
  }
  func.func @transform_6(%arg0: i32) -> (i32, i32) {
    %c0_i32 = arith.constant 0 : i32
    %c0_i32_0 = arith.constant 0 : i32
    %c0_i32_1 = arith.constant 0 : i32
    return %c0_i32, %c0_i32_0 : i32, i32
  }
  func.func @transform_7(%arg0: i32) -> (i32, i32) {
    %c0_i32 = arith.constant 0 : i32
    %c0_i32_0 = arith.constant 0 : i32
    %c0_i32_1 = arith.constant 0 : i32
    return %c0_i32, %c0_i32_0 : i32, i32
  }
  func.func @transform_8(%arg0: i32) -> (i32, i32) {
    %c0_i32 = arith.constant 0 : i32
    %c0_i32_0 = arith.constant 0 : i32
    %c0_i32_1 = arith.constant 0 : i32
    return %c0_i32, %c0_i32_0 : i32, i32
  }
  func.func @transform_9(%arg0: i32) -> (i32, i32) {
    %c0_i32 = arith.constant 0 : i32
    %c0_i32_0 = arith.constant 0 : i32
    return %c0_i32, %arg0 : i32, i32
  }
}

</mosaic_0001>

<bundles_post_ra>
// kernel: tpu_custom_call.1
= control target key start
LH: loop header
LB: loop body
LE: loop exit
PB: predicated region body
PF: predicated region fallthrough
CT: control target
= control target key end

     0   :  { %vm198_vm0 = vcmask 1043456   ;;  %v853_v2 = vmov 0   ;;  %vm149_vm1 = vcmask 97280   ;;  %s1278_s0 = inlined_call_operand.vmem [shape: f32[12,256], index: 0, kind: input, shape index: {}]   ;;  %s1279_s1 = inlined_call_operand.vmem [shape: f32[128,12], index: 1, kind: input, shape index: {}]   ;;  %s1280_s2 = inlined_call_operand.vmem [shape: f32[128,1], index: 2, kind: input, shape index: {}]   ;;  %s1281_s3 = inlined_call_operand.vmem [shape: f32[128,128], index: 3, kind: input, shape index: {}]   ;;  %s1282_s4 = inlined_call_operand.vmem [shape: f32[128,1], index: 4, kind: input, shape index: {}]   ;;  %s1283_s5 = inlined_call_operand.vmem [shape: f32[24,128], index: 5, kind: input, shape index: {}]   ;;  %s1284_s6 = inlined_call_operand.vmem [shape: f32[24,1], index: 6, kind: input, shape index: {}]   ;;  %s1285_s7 = inlined_call_operand.vmem [shape: f32[24,1], index: 7, kind: input, shape index: {}]   ;;  %s1286_s8 = inlined_call_operand.vmem [shape: f32[24,1], index: 8, kind: input, shape index: {}]   ;;  %s1287_s9 = inlined_call_operand.hbm [shape: f32[24,256], index: 9, kind: output, shape index: {}]  }
   0x1   :  { %v51_v0 = vld [vmem:[%s1278_s0 + $0x10] sm:$0xf]  ;;  %v52_v1 = vld [vmem:[%s1278_s0 + $0x18] sm:$0xf]  ;;  %825 = vset.pattern.permute.xlu1 %v853_v2  ;;  %824 = vset.pattern.permute.xlu0 %v853_v2  ;;  %v66_v4 = vld [vmem:[%s1280_s2 + $0x68] sm:$0xff] }
   0x2   :  { %v68_v3 = vld [vmem:[%s1280_s2 + $0x78] sm:$0xff]  ;;  %v49_v5 = vld [vmem:[%s1278_s0] sm:$0xff]  ;;  %786 = vmatpush.msk.msra.mxu0 %vm198_vm0, %v51_v0  ;;  %803 = vmatpush.msk.msra.mxu1 %vm198_vm0, %v52_v1  ;;  %v50_v6 = vld [vmem:[%s1278_s0 + $0x8] sm:$0xff] }
   0x3   :  { %v33_v7 = vld [vmem:[%s1279_s1] sm:$0xff]  ;;  %146 = vperm.xlu0 %824, %v68_v3   ;;  %136 = vperm.xlu1 %825, %v66_v4   ;;  %v64_v8 = vld [vmem:[%s1280_s2 + $0x58] sm:$0xff]  ;;  %v67_v9 = vld [vmem:[%s1280_s2 + $0x70] sm:$0xff] }
   0x4   :  { %220 = vmatpush.msra.mxu0 %v49_v5  ;;  %285 = vmatpush.msra.mxu1 %v50_v6  ;;  %v65_v10 = vld [vmem:[%s1280_s2 + $0x60] sm:$0xff] }
   0x5   :  { %787 = vmatmul.msk.f32.vlgmr.msra.gmra.mxu0 %vm149_vm1, %v33_v7  ;;  %804 = vmatmul.msk.f32.vlgmr.msra.gmra.mxu1 %vm149_vm1, %v33_v7 }
   0x6   :  { %826 = vset.pattern.permute.xlu2 %v853_v2 }
   0x7   :  { %126 = vperm.xlu2 %826, %v64_v8  }
   0x8   :  { %14 = vsyncpa [#allocation3], 0  ;;  %v34_v11 = vld [vmem:[%s1279_s1 + $0x8] sm:$0xff]  ;;  %v63_v12 = vld [vmem:[%s1280_s2 + $0x50] sm:$0xff]  ;;  %s774_s24 = sshll.u32 %s1287_s9, 4  ;;  %s855_s0 = smov 256   ;;  %s775_s24 = int_to_ptr.hbm [resolvable:$true] %s774_s24 }
   0x9   :  { %v62_v13 = vld [vmem:[%s1280_s2 + $0x48] sm:$0xff]  ;;  %v61_v14 = vld [vmem:[%s1280_s2 + $0x40] sm:$0xff]  ;;  %v35_v15 = vld [vmem:[%s1279_s1 + $0x10] sm:$0xff]  ;;  %s856_s25 = smov 16  }
   0xa   :  { %v60_v16 = vld [vmem:[%s1280_s2 + $0x38] sm:$0xff]  ;;  %v59_v17 = vld [vmem:[%s1280_s2 + $0x30] sm:$0xff]  ;;  %v58_v18 = vld [vmem:[%s1280_s2 + $0x28] sm:$0xff] }
   0xb   :  { %141 = vperm.xlu0 %824, %v67_v9   ;;  %131 = vperm.xlu1 %825, %v65_v10   ;;  %v36_v19 = vld [vmem:[%s1279_s1 + $0x18] sm:$0xff]  ;;  %v57_v20 = vld [vmem:[%s1280_s2 + $0x20] sm:$0xff]  ;;  %v55_v22 = vld [vmem:[%s1280_s2 + $0x10] sm:$0xff] }
   0xc   :  { %v56_v21 = vld [vmem:[%s1280_s2 + $0x18] sm:$0xff]  ;;  %v37_v23 = vld [vmem:[%s1279_s1 + $0x20] sm:$0xff]  ;;  %v54_v24 = vld [vmem:[%s1280_s2 + $0x8] sm:$0xff] }
   0xd   :  { %788 = vmatmul.msk.f32.gmra.mxu0 %vm149_vm1, %v34_v11  ;;  %805 = vmatmul.msk.f32.gmra.mxu1 %vm149_vm1, %v34_v11  ;;  %v53_v25 = vld [vmem:[%s1280_s2] sm:$0xff]  ;;  %v398_v26 = vld [vmem:[%s1282_s4 + $0x78] sm:$0xff]  ;;  %v38_v27 = vld [vmem:[%s1279_s1 + $0x28] sm:$0xff] }
   0xe   :  { %v396_v28 = vld [vmem:[%s1282_s4 + $0x68] sm:$0xff]  ;;  %v395_v29 = vld [vmem:[%s1282_s4 + $0x60] sm:$0xff]  ;;  %v39_v30 = vld [vmem:[%s1279_s1 + $0x30] sm:$0xff] }
   0xf   :  { %121 = vperm.xlu2 %826, %v63_v12   ;;  %v393_v31 = vld [vmem:[%s1282_s4 + $0x50] sm:$0xff]  ;;  %v392_v32 = vld [vmem:[%s1282_s4 + $0x48] sm:$0xff]  ;;  %v40_v33 = vld [vmem:[%s1279_s1 + $0x38] sm:$0xff] }
  0x10   :  { %v397_v34 = vld [vmem:[%s1282_s4 + $0x70] sm:$0xff]  ;;  %v390_v35 = vld [vmem:[%s1282_s4 + $0x38] sm:$0xff]  ;;  %v41_v37 = vld [vmem:[%s1279_s1 + $0x40] sm:$0xff] }
  0x11   :  { %v389_v36 = vld [vmem:[%s1282_s4 + $0x30] sm:$0xff]  ;;  %v394_v38 = vld [vmem:[%s1282_s4 + $0x58] sm:$0xff]  ;;  %v387_v39 = vld [vmem:[%s1282_s4 + $0x20] sm:$0xff] }
  0x12   :  { %v386_v40 = vld [vmem:[%s1282_s4 + $0x18] sm:$0xff]  ;;  %v42_v41 = vld [vmem:[%s1279_s1 + $0x48] sm:$0xff]  ;;  %v391_v42 = vld [vmem:[%s1282_s4 + $0x40] sm:$0xff] }
  0x13   :  { %116 = vperm.xlu0 %824, %v62_v13   ;;  %111 = vperm.xlu1 %825, %v61_v14   ;;  %v384_v43 = vld [vmem:[%s1282_s4 + $0x8] sm:$0xff]  ;;  %v383_v44 = vld [vmem:[%s1282_s4] sm:$0xff]  ;;  %v43_v45 = vld [vmem:[%s1279_s1 + $0x50] sm:$0xff] }
  0x14   :  { %v388_v46 = vld [vmem:[%s1282_s4 + $0x28] sm:$0xff]  ;;  %v646_v48 = vld [vmem:[%s1284_s6 + $0x10] sm:$0xff]  ;;  %v44_v49 = vld [vmem:[%s1279_s1 + $0x58] sm:$0xff] }
  0x15   :  { %789 = vmatmul.msk.f32.gmra.mxu0 %vm149_vm1, %v35_v15  ;;  %806 = vmatmul.msk.f32.gmra.mxu1 %vm149_vm1, %v35_v15  ;;  %v645_v47 = vld [vmem:[%s1284_s6 + $0x8] sm:$0xff]  ;;  %v716_v51 = vld [vmem:[%s1285_s7 + $0x10] sm:$0xff]  ;;  %v45_v52 = vld [vmem:[%s1279_s1 + $0x60] sm:$0xff] }
  0x16   :  { %v715_v50 = vld [vmem:[%s1285_s7 + $0x8] sm:$0xff]  ;;  %v385_v53 = vld [vmem:[%s1282_s4 + $0x10] sm:$0xff]  ;;  %v644_v57 = vld [vmem:[%s1284_s6] sm:$0xff] }
  0x17   :  { %106 = vperm.xlu2 %826, %v60_v16   ;;  %v739_v54 = vld [vmem:[%s1286_s8 + $0x8] sm:$0xff]  ;;  %v740_v55 = vld [vmem:[%s1286_s8 + $0x10] sm:$0xff]  ;;  %v714_v59 = vld [vmem:[%s1285_s7] sm:$0xff] }
  0x18   :  { %v46_v56 = vld [vmem:[%s1279_s1 + $0x68] sm:$0xff]  ;;  %v47_v58 = vld [vmem:[%s1279_s1 + $0x70] sm:$0xff]  ;;  %v48_v60 = vld [vmem:[%s1279_s1 + $0x78] sm:$0xff] }
  0x19   :  { %v738_v61 = vld [vmem:[%s1286_s8] sm:$0xff] }
  0x1b   :  { %101 = vperm.xlu0 %824, %v59_v17   ;;  %96 = vperm.xlu1 %825, %v58_v18  }
  0x1d   :  { %790 = vmatmul.msk.f32.gmra.mxu0 %vm149_vm1, %v36_v19  ;;  %807 = vmatmul.msk.f32.gmra.mxu1 %vm149_vm1, %v36_v19 }
  0x1f   :  { %91 = vperm.xlu2 %826, %v57_v20  }
  0x23   :  { %86 = vperm.xlu0 %824, %v56_v21   ;;  %81 = vperm.xlu1 %825, %v55_v22  }
  0x25   :  { %791 = vmatmul.msk.f32.gmra.mxu0 %vm149_vm1, %v37_v23  ;;  %808 = vmatmul.msk.f32.gmra.mxu1 %vm149_vm1, %v37_v23 }
  0x27   :  { %76 = vperm.xlu2 %826, %v54_v24  }
  0x2b   :  { %71 = vperm.xlu0 %824, %v53_v25   ;;  %476 = vperm.xlu1 %825, %v398_v26  }
  0x2d   :  { %792 = vmatmul.msk.f32.gmra.mxu0 %vm149_vm1, %v38_v27  ;;  %809 = vmatmul.msk.f32.gmra.mxu1 %vm149_vm1, %v38_v27 }
  0x2f   :  { %471 = vperm.xlu2 %826, %v397_v34  }
  0x33   :  { %466 = vperm.xlu0 %824, %v396_v28   ;;  %461 = vperm.xlu1 %825, %v395_v29  }
  0x35   :  { %793 = vmatmul.msk.f32.gmra.mxu0 %vm149_vm1, %v39_v30  ;;  %810 = vmatmul.msk.f32.gmra.mxu1 %vm149_vm1, %v39_v30 }
  0x37   :  { %456 = vperm.xlu2 %826, %v394_v38  }
  0x3b   :  { %451 = vperm.xlu0 %824, %v393_v31   ;;  %446 = vperm.xlu1 %825, %v392_v32  }
  0x3d   :  { %794 = vmatmul.msk.f32.gmra.mxu0 %vm149_vm1, %v40_v33  ;;  %811 = vmatmul.msk.f32.gmra.mxu1 %vm149_vm1, %v40_v33 }
  0x3f   :  { %441 = vperm.xlu2 %826, %v391_v42  }
  0x43   :  { %436 = vperm.xlu0 %824, %v390_v35   ;;  %431 = vperm.xlu1 %825, %v389_v36  }
  0x45   :  { %795 = vmatmul.msk.f32.gmra.mxu0 %vm149_vm1, %v41_v37  ;;  %812 = vmatmul.msk.f32.gmra.mxu1 %vm149_vm1, %v41_v37 }
  0x47   :  { %426 = vperm.xlu2 %826, %v388_v46  }
  0x4b   :  { %421 = vperm.xlu0 %824, %v387_v39   ;;  %416 = vperm.xlu1 %825, %v386_v40  }
  0x4d   :  { %796 = vmatmul.msk.f32.gmra.mxu0 %vm149_vm1, %v42_v41  ;;  %813 = vmatmul.msk.f32.gmra.mxu1 %vm149_vm1, %v42_v41 }
  0x4f   :  { %411 = vperm.xlu2 %826, %v385_v53  }
  0x53   :  { %406 = vperm.xlu0 %824, %v384_v43   ;;  %401 = vperm.xlu1 %825, %v383_v44  }
  0x55   :  { %797 = vmatmul.msk.f32.gmra.mxu0 %vm149_vm1, %v43_v45  ;;  %814 = vmatmul.msk.f32.gmra.mxu1 %vm149_vm1, %v43_v45 }
  0x57   :  { %649 = vperm.xlu2 %826, %v644_v57  }
  0x5b   :  { %654 = vperm.xlu0 %824, %v645_v47   ;;  %659 = vperm.xlu1 %825, %v646_v48  }
  0x5d   :  { %798 = vmatmul.msk.f32.gmra.mxu0 %vm149_vm1, %v44_v49  ;;  %815 = vmatmul.msk.f32.gmra.mxu1 %vm149_vm1, %v44_v49 }
  0x5f   :  { %719 = vperm.xlu2 %826, %v714_v59  }
  0x61   :  { %v127_v26 = vpop.permute.xlu2 %126 }
  0x63   :  { %724 = vperm.xlu0 %824, %v715_v50   ;;  %729 = vperm.xlu1 %825, %v716_v51  }
  0x65   :  { %799 = vmatmul.msk.f32.gmra.mxu0 %vm149_vm1, %v45_v52  ;;  %816 = vmatmul.msk.f32.gmra.mxu1 %vm149_vm1, %v45_v52 }
  0x67   :  { %743 = vperm.xlu2 %826, %v738_v61  }
  0x69   :  { %v122_v33 = vpop.permute.xlu2 %121 }
  0x6b   :  { %748 = vperm.xlu0 %824, %v739_v54   ;;  %753 = vperm.xlu1 %825, %v740_v55  }
  0x6d   :  { %800 = vmatmul.msk.f32.gmra.mxu0 %vm149_vm1, %v46_v56  ;;  %817 = vmatmul.msk.f32.gmra.mxu1 %vm149_vm1, %v46_v56 }
  0x71   :  { %v107_v46 = vpop.permute.xlu2 %106 }
  0x75   :  { %801 = vmatmul.msk.f32.gmra.mxu0 %vm149_vm1, %v47_v58  ;;  %818 = vmatmul.msk.f32.gmra.mxu1 %vm149_vm1, %v47_v58  ;;  %v147_v22 = vpop.permute.xlu0 %146  ;;  %v137_v25 = vpop.permute.xlu1 %136 }
  0x7d   :  { %802 = vmatmul.msk.f32.gmra.mxu0 %vm149_vm1, %v48_v60  ;;  %819 = vmatmul.msk.f32.gmra.mxu1 %vm149_vm1, %v48_v60  ;;  %v142_v29 = vpop.permute.xlu0 %141  ;;  %v132_v30 = vpop.permute.xlu1 %131 }
  0x82   :  { %v1122_v62 = vpop.f32.mrf.mxu0  ;;  %v1124_v63 = vpop.f32.mrf.mxu1 }
  0x85   :  { %v117_v34 = vpop.permute.xlu0 %116  ;;  %v112_v41 = vpop.permute.xlu1 %111 }
  0x8a   :  { %v1126_v0 = vpop.f32.mrf.mxu0  ;;  %v1128_v1 = vpop.f32.mrf.mxu1 }
  0x8d   :  { %v102_v51 = vpop.permute.xlu0 %101 }
  0x92   :  { %v1130_v2 = vpop.f32.mrf.mxu0  ;;  %v1132_v3 = vpop.f32.mrf.mxu1 }
  0x9a   :  { %v1134_v4 = vpop.f32.mrf.mxu0  ;;  %v1136_v5 = vpop.f32.mrf.mxu1 }
  0xa2   :  { %v1138_v6 = vpop.f32.mrf.mxu0  ;;  %v1140_v7 = vpop.f32.mrf.mxu1 }
  0xaa   :  { %v1142_v8 = vpop.f32.mrf.mxu0  ;;  %v1144_v9 = vpop.f32.mrf.mxu1 }
  0xb2   :  { %v1146_v10 = vpop.f32.mrf.mxu0  ;;  %v1148_v11 = vpop.f32.mrf.mxu1 }
  0xba   :  { %v1150_v12 = vpop.f32.mrf.mxu0  ;;  %v1152_v13 = vpop.f32.mrf.mxu1 }
  0xc2   :  { %v246_v14 = vpop.f32.mrf.mxu0  ;;  %v311_v15 = vpop.f32.mrf.mxu1 }
  0xca   :  { %v249_v16 = vpop.f32.mrf.mxu0  ;;  %v314_v17 = vpop.f32.mrf.mxu1 }
  0xcb   :  { %v250_v60 = vadd.f32 %v249_v16, %v117_v34  ;;  %v315_v61 = vadd.f32 %v314_v17, %v117_v34  ;;  %v87_v16 = vpop.permute.xlu0 %86  ;;  %v241_v17 = vadd.f32 %v1146_v10, %v102_v51 }
  0xd2   :  { %v252_v18 = vpop.f32.mrf.mxu0  ;;  %v317_v19 = vpop.f32.mrf.mxu1 }
  0xd3   :  { %v253_v56 = vadd.f32 %v252_v18, %v122_v33  ;;  %v318_v57 = vadd.f32 %v317_v19, %v122_v33  ;;  %v244_v18 = vadd.f32 %v1150_v12, %v107_v46  ;;  %v309_v19 = vadd.f32 %v1152_v13, %v107_v46 }
  0xd5   :  { %v349_v12 = vmax.f32 %v244_v18, 0.0  ;;  %v350_v33 = vmax.f32 %v309_v19, 0.0 }
  0xda   :  { %v255_v20 = vpop.f32.mrf.mxu0  ;;  %v320_v21 = vpop.f32.mrf.mxu1 }
  0xdb   :  { %v256_v52 = vadd.f32 %v255_v20, %v127_v26  ;;  %v321_v53 = vadd.f32 %v320_v21, %v127_v26  ;;  %v312_v20 = vadd.f32 %v311_v15, %v112_v41  ;;  %v355_v21 = vmax.f32 %v253_v56, 0.0  ;;  %v377_v56 = vld [vmem:[%s1281_s3 + $0x50] sm:$0xff] }
  0xdc   :  { %v356_v26 = vmax.f32 %v318_v57, 0.0  ;;  %v378_v57 = vld [vmem:[%s1281_s3 + $0x58] sm:$0xff] }
  0xdd   :  { %v352_v15 = vmax.f32 %v312_v20, 0.0 }
  0xe2   :  { %v258_v23 = vpop.f32.mrf.mxu0  ;;  %v323_v24 = vpop.f32.mrf.mxu1 }
  0xe3   :  { %v259_v47 = vadd.f32 %v258_v23, %v132_v30  ;;  %v324_v48 = vadd.f32 %v323_v24, %v132_v30  ;;  %v358_v23 = vmax.f32 %v321_v53, 0.0  ;;  %v97_v24 = vpop.permute.xlu1 %96  ;;  %v306_v30 = vadd.f32 %v1148_v11, %v102_v51  ;;  %v372_v51 = vld [vmem:[%s1281_s3 + $0x28] sm:$0xff]  ;;  %v374_v53 = vld [vmem:[%s1281_s3 + $0x38] sm:$0xff] }
  0xe5   :  { %v359_v58 = vmax.f32 %v259_v47, 0.0  ;;  %v360_v59 = vmax.f32 %v324_v48, 0.0  ;;  %v348_v10 = vmax.f32 %v306_v30, 0.0  ;;  %v367_v48 = vld [vmem:[%s1281_s3] sm:$0xff] }
  0xea   :  { %v261_v27 = vpop.f32.mrf.mxu0  ;;  %v326_v28 = vpop.f32.mrf.mxu1 }
  0xeb   :  { %v262_v42 = vadd.f32 %v261_v27, %v137_v25  ;;  %v327_v43 = vadd.f32 %v326_v28, %v137_v25  ;;  %v247_v25 = vadd.f32 %v246_v14, %v112_v41  ;;  %v92_v27 = vpop.permute.xlu2 %91  ;;  %v353_v28 = vmax.f32 %v250_v60, 0.0  ;;  %v82_v11 = vpop.permute.xlu1 %81  ;;  %v381_v60 = vld [vmem:[%s1281_s3 + $0x70] sm:$0xff] }
  0xec   :  { %v235_v13 = vadd.f32 %v1138_v6, %v92_v27  ;;  %v300_v34 = vadd.f32 %v1140_v7, %v92_v27  ;;  %v294_v6 = vadd.f32 %v1132_v3, %v82_v11  ;;  %v72_v41 = vpop.permute.xlu0 %71 }
  0xed   :  { %v361_v54 = vmax.f32 %v262_v42, 0.0  ;;  %v362_v55 = vmax.f32 %v327_v43, 0.0  ;;  %v351_v14 = vmax.f32 %v247_v25, 0.0 }
  0xee   :  { %v344_v7 = vmax.f32 %v300_v34, 0.0  ;;  %v340_v3 = vmax.f32 %v294_v6, 0.0 }
  0xf2   :  { %v264_v31 = vpop.f32.mrf.mxu0  ;;  %v329_v32 = vpop.f32.mrf.mxu1 }
  0xf3   :  { %v265_v37 = vadd.f32 %v264_v31, %v142_v29  ;;  %v330_v38 = vadd.f32 %v329_v32, %v142_v29  ;;  %v354_v29 = vmax.f32 %v315_v61, 0.0  ;;  %v238_v31 = vadd.f32 %v1142_v8, %v97_v24  ;;  %v382_v61 = vld [vmem:[%s1281_s3 + $0x78] sm:$0xff] }
  0xf4   :  { %v303_v32 = vadd.f32 %v1144_v9, %v97_v24  ;;  %v77_v9 = vpop.permute.xlu2 %76 }
  0xf5   :  { %v363_v49 = vmax.f32 %v265_v37, 0.0  ;;  %v364_v50 = vmax.f32 %v330_v38, 0.0  ;;  %v297_v37 = vadd.f32 %v1136_v5, %v87_v16  ;;  %v345_v8 = vmax.f32 %v238_v31, 0.0 }
  0xf6   :  { %v346_v38 = vmax.f32 %v303_v32, 0.0  ;;  %v226_v42 = vadd.f32 %v1126_v0, %v77_v9 }
  0xf7   :  { %v342_v5 = vmax.f32 %v297_v37, 0.0 }
  0xf8   :  { %v337_v46 = vmax.f32 %v226_v42, 0.0 }
  0xfa   :  { %v267_v35 = vpop.f32.mrf.mxu0  ;;  %v332_v36 = vpop.f32.mrf.mxu1 }
  0xfb   :  { %v268_v39 = vadd.f32 %v267_v35, %v147_v22  ;;  %v333_v40 = vadd.f32 %v332_v36, %v147_v22  ;;  %v357_v22 = vmax.f32 %v256_v52, 0.0  ;;  %v347_v35 = vmax.f32 %v241_v17, 0.0  ;;  %v373_v52 = vld [vmem:[%s1281_s3 + $0x30] sm:$0xff] }
  0xfc   :  { %v232_v36 = vadd.f32 %v1134_v4, %v87_v16  ;;  %v291_v4 = vadd.f32 %v1128_v1, %v77_v9  ;;  %v472_v37 = vpop.permute.xlu2 %471  ;;  %v467_v9 = vpop.permute.xlu0 %466 }
  0xfd   :  { %v365_v44 = vmax.f32 %v268_v39, 0.0  ;;  %v366_v45 = vmax.f32 %v333_v40, 0.0  ;;  %v229_v39 = vadd.f32 %v1130_v2, %v82_v11  ;;  %v343_v40 = vmax.f32 %v235_v13, 0.0 }
  0xfe   :  { %v341_v43 = vmax.f32 %v232_v36, 0.0  ;;  %v338_v47 = vmax.f32 %v291_v4, 0.0  ;;  %v477_v36 = vpop.permute.xlu1 %476 }
  0xff   :  { %479 = vmatpush.msra.mxu2 %v365_v44  ;;  %544 = vmatpush.msra.mxu3 %v366_v45  ;;  %v223_v44 = vadd.f32 %v1122_v62, %v72_v41  ;;  %v288_v45 = vadd.f32 %v1124_v63, %v72_v41  ;;  %v339_v2 = vmax.f32 %v229_v39, 0.0  ;;  %v368_v62 = vld [vmem:[%s1281_s3 + $0x8] sm:$0xff]  ;;  %v369_v63 = vld [vmem:[%s1281_s3 + $0x10] sm:$0xff] }
 0x101   :  { %480 = vmatpush.msra.mxu2 %v363_v49  ;;  %545 = vmatpush.msra.mxu3 %v364_v50  ;;  %v335_v0 = vmax.f32 %v223_v44, 0.0  ;;  %v336_v1 = vmax.f32 %v288_v45, 0.0  ;;  %v370_v49 = vld [vmem:[%s1281_s3 + $0x18] sm:$0xff]  ;;  %v371_v50 = vld [vmem:[%s1281_s3 + $0x20] sm:$0xff] }
 0x103   :  { %481 = vmatpush.msra.mxu2 %v361_v54  ;;  %546 = vmatpush.msra.mxu3 %v362_v55  ;;  %v375_v54 = vld [vmem:[%s1281_s3 + $0x40] sm:$0xff]  ;;  %v376_v55 = vld [vmem:[%s1281_s3 + $0x48] sm:$0xff] }
 0x104   :  { %v452_v41 = vpop.permute.xlu0 %451 }
 0x105   :  { %482 = vmatpush.msra.mxu2 %v359_v58  ;;  %547 = vmatpush.msra.mxu3 %v360_v59  ;;  %v379_v58 = vld [vmem:[%s1281_s3 + $0x60] sm:$0xff]  ;;  %v380_v59 = vld [vmem:[%s1281_s3 + $0x68] sm:$0xff] }
 0x106   :  { %v462_v39 = vpop.permute.xlu1 %461 }
 0x107   :  { %483 = vmatpush.msra.mxu2 %v357_v22  ;;  %548 = vmatpush.msra.mxu3 %v358_v23 }
 0x109   :  { %484 = vmatpush.msra.mxu2 %v355_v21  ;;  %549 = vmatpush.msra.mxu3 %v356_v26 }
 0x10b   :  { %485 = vmatpush.msra.mxu2 %v353_v28  ;;  %550 = vmatpush.msra.mxu3 %v354_v29 }
 0x10d   :  { %486 = vmatpush.msra.mxu2 %v351_v14  ;;  %551 = vmatpush.msra.mxu3 %v352_v15 }
 0x10e   :  { %v447_v42 = vpop.permute.xlu1 %446 }
 0x10f   :  { %487 = vmatpush.msra.mxu2 %v349_v12  ;;  %552 = vmatpush.msra.mxu3 %v350_v33 }
 0x111   :  { %488 = vmatpush.msra.mxu2 %v347_v35  ;;  %553 = vmatpush.msra.mxu3 %v348_v10 }
 0x113   :  { %489 = vmatpush.msra.mxu2 %v345_v8  ;;  %554 = vmatpush.msra.mxu3 %v346_v38 }
 0x115   :  { %490 = vmatpush.msra.mxu2 %v343_v40  ;;  %555 = vmatpush.msra.mxu3 %v344_v7  ;;  %v457_v7 = vpop.permute.xlu2 %456 }
 0x117   :  { %491 = vmatpush.msra.mxu2 %v341_v43  ;;  %556 = vmatpush.msra.mxu3 %v342_v5 }
 0x119   :  { %492 = vmatpush.msra.mxu2 %v339_v2  ;;  %557 = vmatpush.msra.mxu3 %v340_v3 }
 0x11b   :  { %493 = vmatpush.msra.mxu2 %v337_v46  ;;  %558 = vmatpush.msra.mxu3 %v338_v47 }
 0x11d   :  { %494 = vmatpush.msra.mxu2 %v335_v0  ;;  %559 = vmatpush.msra.mxu3 %v336_v1  ;;  %v442_v1 = vpop.permute.xlu2 %441 }
 0x11e   :  { %495 = vmatmul.f32.vlgmr.msra.gmra.mxu2 %v367_v48  ;;  %560 = vmatmul.f32.vlgmr.msra.gmra.mxu3 %v367_v48 }
 0x126   :  { %498 = vmatmul.f32.gmra.mxu2 %v368_v62  ;;  %563 = vmatmul.f32.gmra.mxu3 %v368_v62 }
 0x12e   :  { %501 = vmatmul.f32.gmra.mxu2 %v369_v63  ;;  %566 = vmatmul.f32.gmra.mxu3 %v369_v63 }
 0x136   :  { %504 = vmatmul.f32.gmra.mxu2 %v370_v49  ;;  %569 = vmatmul.f32.gmra.mxu3 %v370_v49 }
 0x13e   :  { %507 = vmatmul.f32.gmra.mxu2 %v371_v50  ;;  %572 = vmatmul.f32.gmra.mxu3 %v371_v50  ;;  %v437_v50 = vpop.permute.xlu0 %436 }
 0x146   :  { %510 = vmatmul.f32.gmra.mxu2 %v372_v51  ;;  %575 = vmatmul.f32.gmra.mxu3 %v372_v51 }
 0x14e   :  { %513 = vmatmul.f32.gmra.mxu2 %v373_v52  ;;  %578 = vmatmul.f32.gmra.mxu3 %v373_v52 }
 0x156   :  { %516 = vmatmul.f32.gmra.mxu2 %v374_v53  ;;  %581 = vmatmul.f32.gmra.mxu3 %v374_v53 }
 0x15e   :  { %519 = vmatmul.f32.gmra.mxu2 %v375_v54  ;;  %584 = vmatmul.f32.gmra.mxu3 %v375_v54 }
 0x166   :  { %522 = vmatmul.f32.gmra.mxu2 %v376_v55  ;;  %587 = vmatmul.f32.gmra.mxu3 %v376_v55  ;;  %v432_v55 = vpop.permute.xlu1 %431 }
 0x16e   :  { %525 = vmatmul.f32.gmra.mxu2 %v377_v56  ;;  %590 = vmatmul.f32.gmra.mxu3 %v377_v56 }
 0x176   :  { %528 = vmatmul.f32.gmra.mxu2 %v378_v57  ;;  %593 = vmatmul.f32.gmra.mxu3 %v378_v57 }
 0x17e   :  { %531 = vmatmul.f32.gmra.mxu2 %v379_v58  ;;  %596 = vmatmul.f32.gmra.mxu3 %v379_v58 }
 0x186   :  { %534 = vmatmul.f32.gmra.mxu2 %v380_v59  ;;  %599 = vmatmul.f32.gmra.mxu3 %v380_v59 }
 0x18e   :  { %537 = vmatmul.f32.gmra.mxu2 %v381_v60  ;;  %602 = vmatmul.f32.gmra.mxu3 %v381_v60 }
 0x196   :  { %540 = vmatmul.f32.gmra.mxu2 %v382_v61  ;;  %605 = vmatmul.f32.gmra.mxu3 %v382_v61 }
 0x1a1   :  { %v1218_v22 = vpop.f32.mrf.mxu2  ;;  %v1220_v23 = vpop.f32.mrf.mxu3 }
 0x1a9   :  { %v1222_v24 = vpop.f32.mrf.mxu2  ;;  %v1224_v25 = vpop.f32.mrf.mxu3 }
 0x1b1   :  { %v1226_v20 = vpop.f32.mrf.mxu2  ;;  %v1228_v21 = vpop.f32.mrf.mxu3 }
 0x1b9   :  { %v1230_v26 = vpop.f32.mrf.mxu2  ;;  %v1232_v27 = vpop.f32.mrf.mxu3 }
 0x1c1   :  { %v1234_v18 = vpop.f32.mrf.mxu2  ;;  %v1236_v19 = vpop.f32.mrf.mxu3 }
 0x1c9   :  { %v1238_v28 = vpop.f32.mrf.mxu2  ;;  %v1240_v29 = vpop.f32.mrf.mxu3 }
 0x1d1   :  { %v1242_v16 = vpop.f32.mrf.mxu2  ;;  %v1244_v17 = vpop.f32.mrf.mxu3 }
 0x1d9   :  { %v1246_v30 = vpop.f32.mrf.mxu2  ;;  %v1248_v14 = vpop.f32.mrf.mxu3 }
 0x1e1   :  { %v520_v15 = vpop.f32.mrf.mxu2  ;;  %v585_v31 = vpop.f32.mrf.mxu3 }
 0x1e9   :  { %v523_v32 = vpop.f32.mrf.mxu2  ;;  %v588_v12 = vpop.f32.mrf.mxu3 }
 0x1ea   :  { %v524_v60 = vadd.f32 %v523_v32, %v447_v42  ;;  %v589_v61 = vadd.f32 %v588_v12, %v447_v42  ;;  %v422_v32 = vpop.permute.xlu0 %421  ;;  %v515_v12 = vadd.f32 %v1242_v16, %v432_v55 }
 0x1eb   :  { %v574_v42 = vadd.f32 %v1236_v19, %v422_v32 }
 0x1ec   :  { %v621_v16 = vmax.f32 %v515_v12, 0.0 }
 0x1f1   :  { %v526_v33 = vpop.f32.mrf.mxu2  ;;  %v591_v13 = vpop.f32.mrf.mxu3 }
 0x1f2   :  { %v527_v56 = vadd.f32 %v526_v33, %v452_v41  ;;  %v592_v57 = vadd.f32 %v591_v13, %v452_v41  ;;  %v518_v33 = vadd.f32 %v1246_v30, %v437_v50  ;;  %v583_v13 = vadd.f32 %v1248_v14, %v437_v50  ;;  %v407_v19 = vpop.permute.xlu0 %406 }
 0x1f3   :  { %v509_v41 = vadd.f32 %v1234_v18, %v422_v32 }
 0x1f4   :  { %v624_v14 = vmax.f32 %v583_v13, 0.0 }
 0x1f5   :  { %v617_v18 = vmax.f32 %v509_v41, 0.0 }
 0x1f9   :  { %v529_v34 = vpop.f32.mrf.mxu2  ;;  %v594_v35 = vpop.f32.mrf.mxu3 }
 0x1fa   :  { %v530_v51 = vadd.f32 %v529_v34, %v457_v7  ;;  %v595_v52 = vadd.f32 %v594_v35, %v457_v7  ;;  %v586_v34 = vadd.f32 %v585_v31, %v442_v1  ;;  %v629_v35 = vmax.f32 %v527_v56, 0.0  ;;  %v655_v50 = vpop.permute.xlu0 %654 }
 0x1fb   :  { %v623_v7 = vmax.f32 %v518_v33, 0.0 }
 0x1fc   :  { %v626_v31 = vmax.f32 %v586_v34, 0.0 }
 0x201   :  { %v532_v10 = vpop.f32.mrf.mxu2  ;;  %v597_v11 = vpop.f32.mrf.mxu3 }
 0x202   :  { %v533_v48 = vadd.f32 %v532_v10, %v462_v39  ;;  %v598_v62 = vadd.f32 %v597_v11, %v462_v39  ;;  %v631_v10 = vmax.f32 %v530_v51, 0.0  ;;  %v632_v11 = vmax.f32 %v595_v52, 0.0 }
 0x203   :  { %v580_v39 = vadd.f32 %v1244_v17, %v432_v55 }
 0x204   :  { %v633_v58 = vmax.f32 %v533_v48, 0.0  ;;  %v634_v59 = vmax.f32 %v598_v62, 0.0 }
 0x209   :  { %v535_v8 = vpop.f32.mrf.mxu2  ;;  %v600_v38 = vpop.f32.mrf.mxu3 }
 0x20a   :  { %v536_v3 = vadd.f32 %v535_v8, %v467_v9  ;;  %v601_v46 = vadd.f32 %v600_v38, %v467_v9  ;;  %v427_v8 = vpop.permute.xlu2 %426  ;;  %v627_v38 = vmax.f32 %v524_v60, 0.0  ;;  %v628_v9 = vmax.f32 %v589_v61, 0.0 }
 0x20b   :  { %v577_v30 = vadd.f32 %v1240_v29, %v427_v8 }
 0x20c   :  { %v635_v53 = vmax.f32 %v536_v3, 0.0  ;;  %v636_v54 = vmax.f32 %v601_v46, 0.0  ;;  %v500_v3 = vadd.f32 %v1222_v24, %v407_v19 }
 0x20e   :  { %v611_v48 = vmax.f32 %v500_v3, 0.0 }
 0x211   :  { %v538_v6 = vpop.f32.mrf.mxu2  ;;  %v603_v40 = vpop.f32.mrf.mxu3 }
 0x212   :  { %v539_v5 = vadd.f32 %v538_v6, %v472_v37  ;;  %v604_v44 = vadd.f32 %v603_v40, %v472_v37  ;;  %v630_v37 = vmax.f32 %v592_v57, 0.0  ;;  %v417_v6 = vpop.permute.xlu1 %416  ;;  %v512_v40 = vadd.f32 %v1238_v28, %v427_v8  ;;  %v412_v29 = vpop.permute.xlu2 %411 }
 0x213   :  { %v506_v17 = vadd.f32 %v1230_v26, %v417_v6  ;;  %v620_v28 = vmax.f32 %v577_v30, 0.0  ;;  %v565_v26 = vadd.f32 %v1224_v25, %v407_v19  ;;  %v641_v25 = vld [vmem:[%s1283_s5] sm:$0xff]  ;;  %v725_v57 = vpop.permute.xlu0 %724 }
 0x214   :  { %v637_v63 = vmax.f32 %v539_v5, 0.0  ;;  %v638_v49 = vmax.f32 %v604_v44, 0.0  ;;  %v619_v5 = vmax.f32 %v512_v40, 0.0  ;;  %v503_v44 = vadd.f32 %v1226_v20, %v412_v29 }
 0x215   :  { %v615_v46 = vmax.f32 %v506_v17, 0.0  ;;  %v612_v62 = vmax.f32 %v565_v26, 0.0 }
 0x219   :  { %v541_v4 = vpop.f32.mrf.mxu2  ;;  %v606_v43 = vpop.f32.mrf.mxu3 }
 0x21a   :  { %v542_v45 = vadd.f32 %v541_v4, %v477_v36  ;;  %v607_v2 = vadd.f32 %v606_v43, %v477_v36  ;;  %v521_v36 = vadd.f32 %v520_v15, %v442_v1  ;;  %v622_v4 = vmax.f32 %v580_v39, 0.0 }
 0x21b   :  { %v571_v43 = vadd.f32 %v1232_v27, %v417_v6  ;;  %v613_v1 = vmax.f32 %v503_v44, 0.0  ;;  %v749_v13 = vpop.permute.xlu0 %748 }
 0x21c   :  { %v639_v47 = vmax.f32 %v542_v45, 0.0  ;;  %v640_v0 = vmax.f32 %v607_v2, 0.0  ;;  %v625_v15 = vmax.f32 %v521_v36, 0.0  ;;  %v568_v45 = vadd.f32 %v1228_v21, %v412_v29 }
 0x21d   :  { %v618_v2 = vmax.f32 %v574_v42, 0.0  ;;  %v616_v27 = vmax.f32 %v571_v43, 0.0 }
 0x21e   :  { %662 = vmatpush.msrb.mxu0 %v639_v47  ;;  %688 = vmatpush.msrb.mxu1 %v640_v0  ;;  %v402_v47 = vpop.permute.xlu1 %401  ;;  %v614_v21 = vmax.f32 %v568_v45, 0.0 }
 0x21f   :  { %v497_v0 = vadd.f32 %v1218_v22, %v402_v47  ;;  %v562_v20 = vadd.f32 %v1220_v23, %v402_v47  ;;  %v642_v22 = vld [vmem:[%s1283_s5 + $0x8] sm:$0xff]  ;;  %v643_v23 = vld [vmem:[%s1283_s5 + $0x10] sm:$0xff]  ;;  %s854_s5 = smov [#allocation2]  }
 0x220   :  { %663 = vmatpush.msrb.mxu0 %v637_v63  ;;  %689 = vmatpush.msrb.mxu1 %v638_v49  ;;  %v650_v49 = vpop.permute.xlu2 %649  ;;  %s772_s2 = sshll.u32 %s854_s5, 4  ;;  %s773_s2 = int_to_ptr.vmem [resolvable:$true] %s772_s2 }
 0x221   :  { %v609_v24 = vmax.f32 %v497_v0, 0.0  ;;  %v610_v63 = vmax.f32 %v562_v20, 0.0 }
 0x222   :  { %664 = vmatpush.msrb.mxu0 %v635_v53  ;;  %690 = vmatpush.msrb.mxu1 %v636_v54 }
 0x224   :  { %665 = vmatpush.msrb.mxu0 %v633_v58  ;;  %691 = vmatpush.msrb.mxu1 %v634_v59 }
 0x226   :  { %666 = vmatpush.msrb.mxu0 %v631_v10  ;;  %692 = vmatpush.msrb.mxu1 %v632_v11  ;;  %v660_v52 = vpop.permute.xlu1 %659 }
 0x228   :  { %667 = vmatpush.msrb.mxu0 %v629_v35  ;;  %693 = vmatpush.msrb.mxu1 %v630_v37  ;;  %v720_v51 = vpop.permute.xlu2 %719 }
 0x22a   :  { %668 = vmatpush.msrb.mxu0 %v627_v38  ;;  %694 = vmatpush.msrb.mxu1 %v628_v9 }
 0x22c   :  { %669 = vmatpush.msrb.mxu0 %v625_v15  ;;  %695 = vmatpush.msrb.mxu1 %v626_v31 }
 0x22e   :  { %670 = vmatpush.msrb.mxu0 %v623_v7  ;;  %696 = vmatpush.msrb.mxu1 %v624_v14  ;;  %v730_v37 = vpop.permute.xlu1 %729 }
 0x230   :  { %671 = vmatpush.msrb.mxu0 %v621_v16  ;;  %697 = vmatpush.msrb.mxu1 %v622_v4  ;;  %v744_v60 = vpop.permute.xlu2 %743 }
 0x232   :  { %672 = vmatpush.msrb.mxu0 %v619_v5  ;;  %698 = vmatpush.msrb.mxu1 %v620_v28 }
 0x234   :  { %673 = vmatpush.msrb.mxu0 %v617_v18  ;;  %699 = vmatpush.msrb.mxu1 %v618_v2 }
 0x236   :  { %674 = vmatpush.msrb.mxu0 %v615_v46  ;;  %700 = vmatpush.msrb.mxu1 %v616_v27  ;;  %v754_v40 = vpop.permute.xlu1 %753 }
 0x238   :  { %675 = vmatpush.msrb.mxu0 %v613_v1  ;;  %701 = vmatpush.msrb.mxu1 %v614_v21 }
 0x23a   :  { %676 = vmatpush.msrb.mxu0 %v611_v48  ;;  %702 = vmatpush.msrb.mxu1 %v612_v62 }
 0x23c   :  { %677 = vmatpush.msrb.mxu0 %v609_v24  ;;  %703 = vmatpush.msrb.mxu1 %v610_v63 }
 0x23d   :  { %678 = vmatmul.f32.vlgmr.msrb.gmra.mxu0 %v641_v25  ;;  %704 = vmatmul.f32.vlgmr.msrb.gmra.mxu1 %v641_v25 }
 0x245   :  { %681 = vmatmul.f32.gmra.mxu0 %v642_v22  ;;  %707 = vmatmul.f32.gmra.mxu1 %v642_v22 }
 0x24d   :  { %684 = vmatmul.f32.gmra.mxu0 %v643_v23  ;;  %710 = vmatmul.f32.gmra.mxu1 %v643_v23 }
 0x2ba   :  { %v679_v53 = vpop.f32.mrf.mxu0  ;;  %v705_v54 = vpop.f32.mrf.mxu1 }
 0x2bb   :  { %v680_v55 = vadd.f32 %v679_v53, %v650_v49  ;;  %v706_v56 = vadd.f32 %v705_v54, %v650_v49 }
 0x2bd   :  { %v732_v58 = vmax.f32 %v680_v55, %v720_v51  ;;  %v733_v59 = vmax.f32 %v706_v56, %v720_v51 }
 0x2bf   :  { %v756_v61 = vmin.f32 %v732_v58, %v744_v60  ;;  %v757_v10 = vmin.f32 %v733_v59, %v744_v60 }
 0x2c1   :  { %762 = vst [vmem:[#allocation2] sm:$0xff] %v756_v61 }
 0x2c2   :  { %763 = vst [vmem:[#allocation2 + $0x8] sm:$0xff] %v757_v10  ;;  %v682_v11 = vpop.f32.mrf.mxu0  ;;  %v708_v36 = vpop.f32.mrf.mxu1 }
 0x2c3   :  { %v683_v34 = vadd.f32 %v682_v11, %v655_v50  ;;  %v709_v35 = vadd.f32 %v708_v36, %v655_v50 }
 0x2c5   :  { %v734_v8 = vmax.f32 %v683_v34, %v725_v57  ;;  %v735_v33 = vmax.f32 %v709_v35, %v725_v57 }
 0x2c7   :  { %v758_v38 = vmin.f32 %v734_v8, %v749_v13  ;;  %v759_v9 = vmin.f32 %v735_v33, %v749_v13 }
 0x2c9   :  { %764 = vst [vmem:[#allocation2 + $0x10] sm:$0xff] %v758_v38 }
 0x2ca   :  { %765 = vst [vmem:[#allocation2 + $0x18] sm:$0xff] %v759_v9  ;;  %v685_v32 = vpop.f32.mrf.mxu0  ;;  %v711_v12 = vpop.f32.mrf.mxu1 }
 0x2cb   :  { %v686_v39 = vadd.f32 %v685_v32, %v660_v52  ;;  %v712_v15 = vadd.f32 %v711_v12, %v660_v52 }
 0x2cd   :  { %v736_v31 = vmax.f32 %v686_v39, %v730_v37  ;;  %v737_v6 = vmax.f32 %v712_v15, %v730_v37 }
 0x2cf   :  { %v760_v30 = vmin.f32 %v736_v31, %v754_v40  ;;  %v761_v7 = vmin.f32 %v737_v6, %v754_v40 }
 0x2d1   :  { %766 = vst [vmem:[#allocation2 + $0x20] sm:$0xff] %v760_v30 }
 0x2d2   :  { %767 = vst [vmem:[#allocation2 + $0x28] sm:$0xff] %v761_v7 }
 0x2d3   :  { %780 = dma.vmem_to_hbm [thread:$0]  %s773_s2, 768, %s775_s24, [#allocation3], %s855_s0, %s855_s0, %s856_s25  }
 0x2d4   :  { %851 = dma.done.wait [#allocation3], 768  }
 0x2d5   :  { %852 = vsyncadd [#allocation3], 4294966528 }
 0x2d6   :  { %785 = vsyncpa [#allocation3], 1 }

</bundles_post_ra>
